<compile_context>
chip_gen: v6e
topology: v6e:2x2x1
jax: 0.10.0
libtpu: 0.0.40
codegen_flags: <defaults>
</compile_context>

<pallas_src>
import functools

import jax
import jax.numpy as jnp
from jax.experimental import pallas as pl
from jax.experimental.pallas import tpu as pltpu

_LANE = 128
_SUBLANE = 8

# Conservative per-call VMEM budget (bytes).  Physical VMEM: 128 MiB (v5e/v6e),
# 64 MiB per TensorCore (v7x).  40 MiB of live buffers + 48 MiB scoped limit leaves
# headroom on every generation.
_VMEM_BUDGET = 40 * 1024 * 1024
_VMEM_LIMIT = 48 * 1024 * 1024


def _round_up(x: int, m: int) -> int:
    return ((x + m - 1) // m) * m


def _round_down(x: int, m: int) -> int:
    return (x // m) * m


# ----------------------------------------------------------------------------------
# One-time (init) parameter preparation.
# ----------------------------------------------------------------------------------
def prepare_router_params(weight, bias):
    """Transform nn.Linear params once, at init time, for the Pallas router.

    Args:
      weight: [G, F]  (PyTorch nn.Linear layout)
      bias:   [G]
    Returns:
      w_t_pad: [F, Gpad]  transposed + lane-padded weight (Gpad = round_up(G, 128))
      b_pad:   [1, Gpad]  f32 lane-padded bias
      G:       original number of groups
    """
    G, F = weight.shape
    g_pad = _round_up(G, _LANE)
    w_t_pad = jnp.zeros((F, g_pad), weight.dtype).at[:, :G].set(weight.T)
    b_pad = jnp.zeros((1, g_pad), jnp.float32).at[0, :G].set(bias.astype(jnp.float32))
    return w_t_pad, b_pad, G


# ----------------------------------------------------------------------------------
# Kernel body.
# ----------------------------------------------------------------------------------
def _router_kernel(x_ref, w_ref, b_ref, o_ref):
    # x_ref: (TB, F)      one batch tile (double-buffered by Pallas)
    # w_ref: (F, Gpad)    full transposed weight, resident across grid steps
    # b_ref: (1, Gpad)    full bias (f32), resident across grid steps
    # o_ref: (TB, Gpad)   lane-dense output tile
    acc = jnp.dot(x_ref[...], w_ref[...], preferred_element_type=jnp.float32)
    o_ref[...] = (acc + b_ref[...]).astype(o_ref.dtype)


# ----------------------------------------------------------------------------------
# Batch-tile selection: VMEM budget + pipelining-friendly grid.
# ----------------------------------------------------------------------------------
def _pick_batch_tile(B, F, g_pad, x_itemsize, w_itemsize, out_itemsize, block_b):
    if B <= _SUBLANE:
        return B  # block dim == full array dim is always legal

    # Live VMEM per grid step:
    #   2 * tb*F*x_it       (double-buffered x tile)
    # + 2 * g_pad*F*w_it    (resident weight; count 2x for buffer-allocation safety)
    # + 2 * tb*g_pad*out_it (double-buffered output tile)
    resident = 2 * g_pad * F * w_itemsize + 2 * g_pad * 4
    per_row = 2 * F * x_itemsize + 2 * g_pad * out_itemsize
    avail = max(_VMEM_BUDGET - resident, _SUBLANE * per_row)
    tb_vmem_max = max(_SUBLANE, _round_down(avail // per_row, _SUBLANE))

    # Aim for >= ~4 grid steps so the x stream stays pipelined against the MXU,
    # while keeping tiles >= 256 rows so the ~0.35us/step overhead is negligible.
    tb = max(256, _round_up(pl.cdiv(B, 4), _SUBLANE))
    tb = min(tb,
             max(_SUBLANE, _round_down(block_b, _SUBLANE)),
             tb_vmem_max,
             max(_SUBLANE, _round_down(B, _SUBLANE)))
    return max(_SUBLANE, _round_down(tb, _SUBLANE))


# ----------------------------------------------------------------------------------
# Forward pass (Pallas).
# ----------------------------------------------------------------------------------
def router_forward_pallas(features, w_t_pad, b_pad, *, num_groups=None, block_b=512):
    """logits = features @ weight.T + bias, with pre-prepared (padded/transposed) params.

    Args:
      features:  [B, F]
      w_t_pad:   [F, Gpad]  from prepare_router_params
      b_pad:     [1, Gpad]  from prepare_router_params
      num_groups: original G (pad columns are sliced off); defaults to Gpad.
      block_b:   upper bound on the batch tile size.
    Returns:
      logits: [B, num_groups] in features.dtype
    """
    B, F = features.shape
    F_w, g_pad = w_t_pad.shape
    assert F == F_w, "weight feature dim mismatch"
    G = g_pad if num_groups is None else num_groups
    out_dtype = features.dtype

    tb = _pick_batch_tile(
        B, F, g_pad,
        features.dtype.itemsize, w_t_pad.dtype.itemsize, jnp.dtype(out_dtype).itemsize,
        block_b,
    )
    grid = (pl.cdiv(B, tb),)  # partial last block handled by Pallas (no x pad copy)

    cost = pl.CostEstimate(
        flops=2 * B * F * g_pad,
        transcendentals=0,
        bytes_accessed=(features.size * features.dtype.itemsize
                        + w_t_pad.size * w_t_pad.dtype.itemsize
                        + b_pad.size * b_pad.dtype.itemsize
                        + B * g_pad * jnp.dtype(out_dtype).itemsize),
    )

    out_padded = pl.pallas_call(
        _router_kernel,
        out_shape=jax.ShapeDtypeStruct((B, g_pad), out_dtype),
        grid_spec=pl.GridSpec(
            grid=grid,
            in_specs=[
                # x: one batch tile per grid step (double-buffered by Pallas).
                # TODO(synk): bump to pipeline_mode=pl.Buffered(3) if a profile shows
                # exposed x-stream DMA and the VMEM budget allows it.
                pl.BlockSpec((tb, F), lambda i: (i, 0)),
                # weight / bias: same block index every step -> resident in VMEM,
                # DMA'd only once.
                pl.BlockSpec((F, g_pad), lambda i: (0, 0)),
                pl.BlockSpec((1, g_pad), lambda i: (0, 0)),
            ],
            out_specs=pl.BlockSpec((tb, g_pad), lambda i: (i, 0)),
        ),
        compiler_params=pltpu.CompilerParams(
            dimension_semantics=("parallel",),
            vmem_limit_bytes=_VMEM_LIMIT,
        ),
        cost_estimate=cost,
    )(features, w_t_pad, b_pad)

    # Strip the group (lane) padding.  Batch needs no slice: out_shape is exactly B.
    return out_padded[:, :G]


def router_forward(features, weight, bias, **kwargs):
    """Dispatcher taking raw PyTorch-layout params.

    Tiny, bandwidth-trivial problems go to a fused XLA dot (launch + pad/slice
    overhead dominates any kernel); larger ones use the Pallas path.
    """
    B, F = features.shape
    bytes_moved = B * F * features.dtype.itemsize
    if bytes_moved < (1 << 20):  # < 1 MiB of activations
        return (features @ weight.T + bias).astype(features.dtype)
    w_t_pad, b_pad, G = prepare_router_params(weight, bias)
    return router_forward_pallas(features, w_t_pad, b_pad, num_groups=G, **kwargs)


if __name__ == "__main__":
    # Small shapes consistent with the module:
    #   feature_dim = 32, num_groups = 4 (group_to_labels with 4 keys), batch = 8
    B, F, G = 8, 32, 4

    key = jax.random.PRNGKey(0)
    k_x, k_w, k_b = jax.random.split(key, 3)

    features = jax.random.normal(k_x, (B, F), dtype=jnp.float32)
    bound = 1.0 / (F ** 0.5)
    weight = jax.random.uniform(k_w, (G, F), minval=-bound, maxval=bound, dtype=jnp.float32)
    bias = jax.random.uniform(k_b, (G,), minval=-bound, maxval=bound, dtype=jnp.float32)

    # Init-time parameter prep (done once; not part of the per-call path).
    w_t_pad, b_pad, num_groups = prepare_router_params(weight, bias)

    # Exercise the Pallas path directly (the dispatcher would route this toy size to XLA).
    run = jax.jit(functools.partial(router_forward_pallas, num_groups=num_groups))
    out = run(features, w_t_pad, b_pad)
    out = jax.block_until_ready(out)

    # Reference check (same math as torch.nn.Linear forward).
    ref = features @ weight.T + bias
    assert out.shape == (B, G)
    assert jnp.allclose(out, ref, atol=1e-5, rtol=1e-5), "mismatch vs reference"

    print("KERNEL_OK")
</pallas_src>

<mosaic_0001>
module attributes {stable_mosaic.version = 11 : i64} {
  func.func @_router_kernel(%arg0: i32, %arg1: memref<8x32xf32, #tpu.memory_space<vmem>>, %arg2: memref<32x128xf32, #tpu.memory_space<vmem>>, %arg3: memref<1x128xf32, #tpu.memory_space<vmem>>, %arg4: memref<8x128xf32, #tpu.memory_space<vmem>>) attributes {dimension_semantics = [#tpu.dimension_semantics<parallel>], iteration_bounds = array<i64: 1>, scalar_prefetch = 0 : i64, scratch_operands = 0 : i64, tpu.core_type = #tpu.core_type<tc>, window_params = [{transform_indices = @transform_0, window_bounds = array<i64: 8, 32>}, {pipeline_mode = #tpu.pipeline_mode<synchronous>, transform_indices = @transform_1, window_bounds = array<i64: 32, 128>}, {pipeline_mode = #tpu.pipeline_mode<synchronous>, transform_indices = @transform_2, window_bounds = array<i64: 1, 128>}, {transform_indices = @transform_3, window_bounds = array<i64: 8, 128>}]} {
    %c0 = arith.constant 0 : index
    %c0_0 = arith.constant 0 : index
    %0 = vector.load %arg1[%c0, %c0_0] : memref<8x32xf32, #tpu.memory_space<vmem>>, vector<8x32xf32>
    %c0_1 = arith.constant 0 : index
    %c0_2 = arith.constant 0 : index
    %1 = vector.load %arg2[%c0_1, %c0_2] : memref<32x128xf32, #tpu.memory_space<vmem>>, vector<32x128xf32>
    %cst = arith.constant dense<0.000000e+00> : vector<8x128xf32>
    %2 = tpu.matmul %0, %1, %cst {dimension_numbers = #tpu.dot_dimension_numbers<[1], [0], [0], [1], [0, 0, 1, 1], [], []>} : vector<8x32xf32>, vector<32x128xf32>, vector<8x128xf32> -> vector<8x128xf32>
    %c0_3 = arith.constant 0 : index
    %c0_4 = arith.constant 0 : index
    %3 = vector.load %arg3[%c0_3, %c0_4] : memref<1x128xf32, #tpu.memory_space<vmem>>, vector<1x128xf32>
    %4 = vector.broadcast %3 : vector<1x128xf32> to vector<8x128xf32>
    %5 = arith.addf %2, %4 : vector<8x128xf32>
    %c0_5 = arith.constant 0 : index
    %c0_6 = arith.constant 0 : index
    %6 = vector.load %arg4[%c0_5, %c0_6] : memref<8x128xf32, #tpu.memory_space<vmem>>, vector<8x128xf32>
    tpu.vector_store %arg4[%c0_5, %c0_6], %5 {strides = array<i32>} : memref<8x128xf32, #tpu.memory_space<vmem>>, vector<8x128xf32>,
    return
  }
  func.func @transform_0(%arg0: i32) -> (i32, i32) {
    %c0_i32 = arith.constant 0 : i32
    %c0_i32_0 = arith.constant 0 : i32
    return %arg0, %c0_i32 : i32, i32
  }
  func.func @transform_1(%arg0: i32) -> (i32, i32) {
    %c0_i32 = arith.constant 0 : i32
    %c0_i32_0 = arith.constant 0 : i32
    %c0_i32_1 = arith.constant 0 : i32
    return %c0_i32, %c0_i32_0 : i32, i32
  }
  func.func @transform_2(%arg0: i32) -> (i32, i32) {
    %c0_i32 = arith.constant 0 : i32
    %c0_i32_0 = arith.constant 0 : i32
    %c0_i32_1 = arith.constant 0 : i32
    return %c0_i32, %c0_i32_0 : i32, i32
  }
  func.func @transform_3(%arg0: i32) -> (i32, i32) {
    %c0_i32 = arith.constant 0 : i32
    %c0_i32_0 = arith.constant 0 : i32
    return %arg0, %c0_i32 : i32, i32
  }
}

</mosaic_0001>

<bundles_post_ra>
// kernel: router_forward_pallas.1
= control target key start
LH: loop header
LB: loop body
LE: loop exit
PB: predicated region body
PF: predicated region fallthrough
CT: control target
= control target key end

     0   :  { %8 = vsyncpa [#allocation3], 0  ;;  %s239_s0 = inlined_call_operand.hbm [shape: f32[8,32], index: 0, kind: input, shape index: {}]   ;;  %s240_s1 = inlined_call_operand.hbm [shape: f32[32,128], index: 1, kind: input, shape index: {}]   ;;  %s241_s2 = inlined_call_operand.vmem [shape: f32[1,128], index: 2, kind: input, shape index: {}]   ;;  %s242_s3 = inlined_call_operand.vmem [shape: f32[8,128], index: 3, kind: output, shape index: {}]  }
   0x1   :  { %9 = vsyncpa [#allocation5], 0  ;;  %s201_s12 = smov [#allocation2]   ;;  %s202_s14 = smov [#allocation4]  }
   0x2   :  { %s16_s13 = sshll.u32 %s201_s12, 4  ;;  %s25_s15 = sshll.u32 %s202_s14, 4  ;;  %s17_s13 = int_to_ptr.vmem [resolvable:$true] %s16_s13  ;;  %s26_s15 = int_to_ptr.vmem [resolvable:$true] %s25_s15 }
   0x3   :  { %s165_s16 = scalar_lea.vmem %s17_s13, 128  ;;  %p170_p1 = scmp.lt.s32.totalorder %s17_s13, %s17_s13 }
   0x4   :  { %p166_p0 = scmp.ne.s32.totalorder %s17_s13, %s165_s16  ;;  %p171_p2 = scmp.lt.s32.totalorder %s165_s16, %s165_s16 }
   0x6   :  { %p172_p3 = por %p171_p2, %p170_p1 }
   0x8   :  { %p173_p4 = pnand %p172_p3, %p166_p0 }
   0xa   :  { %176 = shalt.err (!%p173_p4)
}
   0xb   :  { %19 = dma.hbm_to_vmem [thread:$0]  %s239_s0, 128, %s17_s13, [#allocation3]  }
   0xc   :  { %s185_s19 = scalar_lea.vmem %s26_s15, 512  ;;  %p190_p6 = scmp.lt.s32.totalorder %s26_s15, %s26_s15 }
   0xd   :  { %p186_p5 = scmp.ne.s32.totalorder %s26_s15, %s185_s19  ;;  %p191_p7 = scmp.lt.s32.totalorder %s185_s19, %s185_s19 }
   0xf   :  { %p192_p8 = por %p191_p7, %p190_p6 }
  0x11   :  { %p193_p9 = pnand %p192_p8, %p186_p5 }
  0x13   :  { %196 = shalt.err (!%p193_p9)
}
  0x14   :  { %s203_s20 = smov 128   ;;  %s204_s21 = smov 8  }
  0x15   :  { %31 = dma.hbm_to_vmem [thread:$0]  %s240_s1, 512, %s26_s15, [#allocation5], %s203_s20, %s203_s20, %s204_s21  }
  0x16   :  { %197 = dma.done.wait [#allocation3], 128  }
  0x17   :  { %198 = vsyncadd [#allocation3], 4294967168 }
  0x18   :  { %199 = dma.done.wait [#allocation5], 512  }
  0x19   :  { %200 = vsyncadd [#allocation5], 4294966784  ;;  %v205_v0 = vmov 0.0   ;;  %vm206_vm0 = vmmov 0   ;;  %v44_v1 = vld [vmem:[#allocation4 + $0x18] sm:$0xff]  ;;  %v43_v2 = vld [vmem:[#allocation4 + $0x10] sm:$0xff] }
  0x1a   :  { %140 = vmatprep.subr.mxu0 %v205_v0  ;;  %148 = vmatprep.mubr.msk.f32.mxu0 %vm206_vm0, %v205_v0  ;;  %v42_v3 = vld [vmem:[#allocation4 + $0x8] sm:$0xff]  ;;  %v41_v4 = vld [vmem:[#allocation4] sm:$0xff]  ;;  %v40_v5 = vld [vmem:[#allocation2] sm:$0xff]  ;;  %vm52_vm1 = vcmask 261120  }
  0x1b   :  { %141 = vmatpush3.msra.mxu0 %v44_v1  ;;  %v133_v6 = vld [vmem:[%s241_s2] ss:$0 sm:$0xff] }
  0x1c   :  { %142 = vmatprep.subr.mxu0 %v205_v0 }
  0x1d   :  { %143 = vmatpush3.msra.mxu0 %v43_v2 }
  0x1e   :  { %144 = vmatprep.subr.mxu0 %v205_v0 }
  0x1f   :  { %145 = vmatpush3.msra.mxu0 %v42_v3 }
  0x20   :  { %146 = vmatprep.subr.mxu0 %v205_v0 }
  0x21   :  { %147 = vmatpush3.msra.mxu0 %v41_v4 }
  0x22   :  { %149 = vmatmul.mubr.msk.f32.vlgmr.msra.gmra.mxu0 %vm52_vm1, %v40_v5 }
  0xe2   :  { %v122_v7 = vpop.f32.mrf.mxu0 }
  0xe3   :  { %v123_v8 = vadd.f32 %v133_v6, %v122_v7 }
  0xe4   :  { %v150_v9 = vpop.f32.mrf.mxu0 }
  0xe5   :  { %126 = vst [vmem:[%s242_s3] sm:$0xff] %v123_v8 }
  0xe6   :  { %131 = vsyncpa [#allocation3], 1 }
  0xe7   :  { %132 = vsyncpa [#allocation5], 1 }

</bundles_post_ra>
